<compile_context>
chip_gen: v7x
topology: tpu7x:2x2x1
jax: 0.10.0
libtpu: 0.0.40
codegen_flags: <defaults>
</compile_context>

<pallas_src>
import functools

import jax
import jax.numpy as jnp
from jax.experimental import pallas as pl
from jax.experimental.pallas import tpu as pltpu


# ----------------------------- small helpers ------------------------------


def _round_up(x, m):
    return (x + m - 1) // m * m


def _sublane_multiple(dtype):
    # Sub-32-bit dtypes pack along sublanes: 8 rows for 4 B, 16 for 2 B, 32 for 1 B.
    return max(8, 32 // jnp.dtype(dtype).itemsize)


def _padded_block_bytes(block_b, s, d, dtype):
    """Bytes one (block_b, s, d) block actually occupies in VMEM (tiled layout)."""
    dt = jnp.dtype(dtype)
    return block_b * _round_up(s, _sublane_multiple(dt)) * _round_up(d, 128) * dt.itemsize


def _vmem_capacity_bytes():
    """Per-core VMEM capacity; conservative fallback if the query is unavailable."""
    try:
        cap = int(pltpu.get_tpu_info().vmem_capacity_bytes)
        if cap > 0:
            return cap
    except Exception:
        pass
    try:
        kind = jax.devices()[0].device_kind.lower()
        if "v5" in kind or "v6" in kind:
            return 128 << 20
    except Exception:
        pass
    return 64 << 20  # v7x per-TensorCore VMEM (smallest of the targets)


def _dropout_uniform(seed, shape):
    """Host-side uniform [0,1) float32 randoms (replaces the TPU-only stateful PRNG)."""
    return jax.random.uniform(jax.random.PRNGKey(seed), shape, dtype=jnp.float32)


# --------------------------------- kernel ---------------------------------


def _attn_dropout_kernel(*refs, scale, dropout_p, inv_keep_scale, apply_dropout):
    if apply_dropout:
        q_ref, k_ref, v_ref, u_ref, o_ref = refs
    else:
        q_ref, k_ref, v_ref, o_ref = refs

    q = q_ref[...]  # (Bt, S, D)
    k = k_ref[...]  # (Bt, S, D)
    v = v_ref[...]  # (Bt, S, D)

    # scores = q @ k^T : batched contraction on the feature axis, fp32 accumulate.
    s = jnp.einsum("bqd,bkd->bqk", q, k, preferred_element_type=jnp.float32)
    if scale != 1.0:
        s = s * scale

    # Numerically-stable row softmax over the tiny (S, S) score tile.
    m = jnp.max(s, axis=-1, keepdims=True)
    e = jnp.exp(s - m)
    denom = jnp.sum(e, axis=-1, keepdims=True)
    # Approx reciprocal (EUP slot, nearly free) on the already-noisy dropout
    # path; exact divide-quality reciprocal on the eval path.
    inv = pl.reciprocal(denom, approx=apply_dropout)

    if apply_dropout:
        # Fold the survivor scale 1/(1-p) into the normalizer; keep/drop is a
        # single float compare against the precomputed uniforms.
        inv = inv * inv_keep_scale
        keep = u_ref[...] >= jnp.float32(dropout_p)
        p = jnp.where(keep, e * inv, 0.0)
    else:
        p = e * inv

    o_ref[...] = jnp.einsum(
        "bqk,bkd->bqd", p.astype(v.dtype), v,
        preferred_element_type=jnp.float32,
    ).astype(o_ref.dtype)


# -------------------------------- wrapper ----------------------------------


def attention_with_dropout(q, k, v, scale, *, seed=0, dropout_p=0.5,
                           training=True, io_dtype=None, block_b=None):
    """dropout(softmax(q @ k^T * scale, dim=-1), p) @ v  for q, k, v: [B, S, D].

    io_dtype: optional HBM dtype for q/k/v/out (e.g. jnp.bfloat16 to halve HBM
    traffic on this bandwidth-bound kernel).  Accumulation stays fp32.
    """
    B, S, D = q.shape
    assert k.shape == (B, S, D) and v.shape == (B, S, D)

    if io_dtype is not None:
        io_dtype = jnp.dtype(io_dtype)
        q, k, v = q.astype(io_dtype), k.astype(io_dtype), v.astype(io_dtype)
    io_dtype = jnp.dtype(q.dtype)

    apply_dropout = bool(training) and float(dropout_p) > 0.0
    if apply_dropout and not (0.0 < dropout_p < 1.0):
        raise ValueError(f"dropout_p must be in [0, 1), got {dropout_p}")

    # ---- VMEM-aware block-size selection (padded tile dims, double-buffered).
    vmem_cap = _vmem_capacity_bytes()
    vmem_budget = int(0.85 * vmem_cap)

    def footprint(bb):
        qkv = 3 * 2 * _padded_block_bytes(bb, S, D, io_dtype)      # double-buffered
        out = 2 * _padded_block_bytes(bb, S, D, io_dtype)
        bits = 2 * _padded_block_bytes(bb, S, S, jnp.float32) if apply_dropout else 0
        interm = 4 * _padded_block_bytes(bb, S, S, jnp.float32)    # s / e / p / misc
        return qkv + out + bits + interm + (2 << 20)               # headroom

    if block_b is None:
        max_bb = max(1, B // 2)  # keep >= 2 grid steps so v7x megacore can shard
        candidates = [d for d in range(1, max_bb + 1) if B % d == 0]
        fitting = [d for d in candidates if footprint(d) <= vmem_budget]
        block_b = max(fitting) if fitting else 1
    assert B % block_b == 0

    vmem_limit = int(min(max(footprint(block_b), 32 << 20), vmem_budget))

    kernel = functools.partial(
        _attn_dropout_kernel,
        scale=float(scale),
        dropout_p=float(dropout_p),
        inv_keep_scale=float(1.0 / (1.0 - dropout_p)) if apply_dropout else 1.0,
        apply_dropout=apply_dropout,
    )

    idx = lambda i: (i, 0, 0)
    in_specs = [
        pl.BlockSpec((block_b, S, D), idx),
        pl.BlockSpec((block_b, S, D), idx),
        pl.BlockSpec((block_b, S, D), idx),
    ]
    args = [q, k, v]
    if apply_dropout:
        in_specs.append(pl.BlockSpec((block_b, S, S), idx))
        args.append(_dropout_uniform(seed, (B, S, S)))

    return pl.pallas_call(
        kernel,
        out_shape=jax.ShapeDtypeStruct((B, S, D), io_dtype),
        grid=(B // block_b,),
        in_specs=in_specs,
        out_specs=pl.BlockSpec((block_b, S, D), idx),
        compiler_params=pltpu.CompilerParams(
            # Grid steps are fully independent (randomness arrives as data),
            # so the batch axis can shard across v7x's two TensorCores.
            dimension_semantics=("parallel",),
            vmem_limit_bytes=vmem_limit,
        ),
    )(*args)


# ------------------------------- reference ---------------------------------


def _reference(q, k, v, scale, *, uniforms=None, dropout_p=0.5):
    s = jnp.einsum("bqd,bkd->bqk", q, k) * scale
    p = jax.nn.softmax(s, axis=-1)
    if uniforms is not None:
        keep = uniforms >= jnp.float32(dropout_p)
        p = jnp.where(keep, p / (1.0 - dropout_p), 0.0)
    return jnp.einsum("bqk,bkd->bqd", p, v)


# -------------------------------- self-test ---------------------------------


if __name__ == "__main__":
    # Small shapes consistent with the module's (batch, seq, feature) inputs.
    B, S, D = 2, 8, 32
    scale = 1.0
    dropout_p = 0.5
    seed = 0

    key = jax.random.PRNGKey(0)
    kq, kk, kv = jax.random.split(key, 3)
    q = jax.random.normal(kq, (B, S, D), dtype=jnp.float32)
    k = jax.random.normal(kk, (B, S, D), dtype=jnp.float32)
    v = jax.random.normal(kv, (B, S, D), dtype=jnp.float32)

    def rel_err(x, ref):
        x = x.astype(jnp.float32)
        return float(jnp.max(jnp.abs(x - ref)) / (jnp.max(jnp.abs(ref)) + 1e-6))

    # 1) Eval mode (dropout = identity), fp32 I/O, vs pure-JAX reference.
    out_eval = jax.block_until_ready(
        attention_with_dropout(q, k, v, scale, training=False))
    ref_eval = _reference(q, k, v, scale)
    assert out_eval.shape == (B, S, D) and out_eval.dtype == q.dtype
    assert rel_err(out_eval, ref_eval) < 2e-2, "eval path mismatch vs reference"

    # 2) Training mode, fp32 I/O: mask is reproducible from (seed, shape), so an
    #    exact elementwise reference exists (tol covers approx reciprocal / MXU).
    out_train = jax.block_until_ready(
        attention_with_dropout(q, k, v, scale, seed=seed,
                               dropout_p=dropout_p, training=True))
    u = _dropout_uniform(seed, (B, S, S))
    ref_train = _reference(q, k, v, scale, uniforms=u, dropout_p=dropout_p)
    assert out_train.shape == (B, S, D)
    assert bool(jnp.all(jnp.isfinite(out_train)))
    assert rel_err(out_train, ref_train) < 2e-2, "train path mismatch vs reference"

    # 3) Training mode with bf16 HBM I/O (the big bandwidth lever at real shapes).
    out_bf16 = jax.block_until_ready(
        attention_with_dropout(q, k, v, scale, seed=seed,
                               dropout_p=dropout_p, training=True,
                               io_dtype=jnp.bfloat16))
    qb, kb, vb = (x.astype(jnp.bfloat16).astype(jnp.float32) for x in (q, k, v))
    ref_bf16 = _reference(qb, kb, vb, scale, uniforms=u, dropout_p=dropout_p)
    assert out_bf16.shape == (B, S, D) and out_bf16.dtype == jnp.bfloat16
    assert rel_err(out_bf16, ref_bf16) < 6e-2, "bf16 path mismatch vs reference"

    print("KERNEL_OK")
</pallas_src>

<mosaic_0001>
module attributes {stable_mosaic.version = 11 : i64} {
  func.func @_attn_dropout_kernel(%arg0: i32, %arg1: memref<1x8x32xf32, #tpu.memory_space<vmem>>, %arg2: memref<1x8x32xf32, #tpu.memory_space<vmem>>, %arg3: memref<1x8x32xf32, #tpu.memory_space<vmem>>, %arg4: memref<1x8x32xf32, #tpu.memory_space<vmem>>) attributes {dimension_semantics = [#tpu.dimension_semantics<parallel>], iteration_bounds = array<i64: 2>, scalar_prefetch = 0 : i64, scratch_operands = 0 : i64, tpu.core_type = #tpu.core_type<tc>, window_params = [{transform_indices = @transform_0, window_bounds = array<i64: 1, 8, 32>}, {transform_indices = @transform_1, window_bounds = array<i64: 1, 8, 32>}, {transform_indices = @transform_2, window_bounds = array<i64: 1, 8, 32>}, {transform_indices = @transform_3, window_bounds = array<i64: 1, 8, 32>}]} {
    %c0 = arith.constant 0 : index
    %c0_0 = arith.constant 0 : index
    %c0_1 = arith.constant 0 : index
    %0 = vector.load %arg1[%c0, %c0_0, %c0_1] : memref<1x8x32xf32, #tpu.memory_space<vmem>>, vector<1x8x32xf32>
    %c0_2 = arith.constant 0 : index
    %c0_3 = arith.constant 0 : index
    %c0_4 = arith.constant 0 : index
    %1 = vector.load %arg2[%c0_2, %c0_3, %c0_4] : memref<1x8x32xf32, #tpu.memory_space<vmem>>, vector<1x8x32xf32>
    %c0_5 = arith.constant 0 : index
    %c0_6 = arith.constant 0 : index
    %c0_7 = arith.constant 0 : index
    %2 = vector.load %arg3[%c0_5, %c0_6, %c0_7] : memref<1x8x32xf32, #tpu.memory_space<vmem>>, vector<1x8x32xf32>
    "tpu.trace_start"() <{level = 10 : i32, message = "bqd,bkd->bqk"}> : () -> ()
    %cst = arith.constant dense<0.000000e+00> : vector<1x8x8xf32>
    %3 = tpu.matmul %0, %1, %cst {dimension_numbers = #tpu.dot_dimension_numbers<[2], [2], [1], [1], [0, 0, 0, 1, 1, 1], [0], [0]>} : vector<1x8x32xf32>, vector<1x8x32xf32>, vector<1x8x8xf32> -> vector<1x8x8xf32>
    "tpu.trace_stop"() : () -> ()
    %cst_8 = arith.constant dense<0xFF800000> : vector<1x8xf32>
    %4 = vector.multi_reduction <maximumf>, %3, %cst_8 [2] : vector<1x8x8xf32> to vector<1x8xf32>
    %5 = vector.shape_cast %4 : vector<1x8xf32> to vector<1x8x1xf32>
    %6 = vector.broadcast %5 : vector<1x8x1xf32> to vector<1x8x8xf32>
    %7 = arith.subf %3, %6 : vector<1x8x8xf32>
    %8 = math.exp %7 : vector<1x8x8xf32>
    %cst_9 = arith.constant dense<0.000000e+00> : vector<1x8xf32>
    %9 = vector.multi_reduction <add>, %8, %cst_9 [2] : vector<1x8x8xf32> to vector<1x8xf32>
    %10 = vector.shape_cast %9 : vector<1x8xf32> to vector<1x8x1xf32>
    %11 = tpu.reciprocal %10 : vector<1x8x1xf32> -> vector<1x8x1xf32>
    %12 = vector.broadcast %11 : vector<1x8x1xf32> to vector<1x8x8xf32>
    %13 = arith.mulf %8, %12 : vector<1x8x8xf32>
    "tpu.trace_start"() <{level = 10 : i32, message = "bqk,bkd->bqd"}> : () -> ()
    %cst_10 = arith.constant dense<0.000000e+00> : vector<1x8x32xf32>
    %14 = tpu.matmul %13, %2, %cst_10 {dimension_numbers = #tpu.dot_dimension_numbers<[2], [1], [1], [2], [0, 0, 0, 1, 1, 2], [0], [0]>} : vector<1x8x8xf32>, vector<1x8x32xf32>, vector<1x8x32xf32> -> vector<1x8x32xf32>
    "tpu.trace_stop"() : () -> ()
    %c0_11 = arith.constant 0 : index
    %c0_12 = arith.constant 0 : index
    %c0_13 = arith.constant 0 : index
    %15 = vector.load %arg4[%c0_11, %c0_12, %c0_13] : memref<1x8x32xf32, #tpu.memory_space<vmem>>, vector<1x8x32xf32>
    tpu.vector_store %arg4[%c0_11, %c0_12, %c0_13], %14 {strides = array<i32>} : memref<1x8x32xf32, #tpu.memory_space<vmem>>, vector<1x8x32xf32>,
    return
  }
  func.func @transform_0(%arg0: i32) -> (i32, i32, i32) {
    %c0_i32 = arith.constant 0 : i32
    %c0_i32_0 = arith.constant 0 : i32
    %c0_i32_1 = arith.constant 0 : i32
    return %arg0, %c0_i32, %c0_i32_0 : i32, i32, i32
  }
  func.func @transform_1(%arg0: i32) -> (i32, i32, i32) {
    %c0_i32 = arith.constant 0 : i32
    %c0_i32_0 = arith.constant 0 : i32
    %c0_i32_1 = arith.constant 0 : i32
    return %arg0, %c0_i32, %c0_i32_0 : i32, i32, i32
  }
  func.func @transform_2(%arg0: i32) -> (i32, i32, i32) {
    %c0_i32 = arith.constant 0 : i32
    %c0_i32_0 = arith.constant 0 : i32
    %c0_i32_1 = arith.constant 0 : i32
    return %arg0, %c0_i32, %c0_i32_0 : i32, i32, i32
  }
  func.func @transform_3(%arg0: i32) -> (i32, i32, i32) {
    %c0_i32 = arith.constant 0 : i32
    %c0_i32_0 = arith.constant 0 : i32
    %c0_i32_1 = arith.constant 0 : i32
    return %arg0, %c0_i32, %c0_i32_0 : i32, i32, i32
  }
}

</mosaic_0001>

<bundles_post_ra>
// kernel: tpu_custom_call.1
= control target key start
LH: loop header
LB: loop body
LE: loop exit
PB: predicated region body
PF: predicated region fallthrough
CT: control target
= control target key end

     0   :  { %s1076_s0 = inlined_call_operand.hbm [shape: f32[2,8,32], index: 0, kind: input, shape index: {}]   ;;  %s1077_s1 = inlined_call_operand.hbm [shape: f32[2,8,32], index: 1, kind: input, shape index: {}]   ;;  %s1078_s2 = inlined_call_operand.hbm [shape: f32[2,8,32], index: 2, kind: input, shape index: {}]   ;;  %s1079_s3 = inlined_call_operand.hbm [shape: f32[2,8,32], index: 3, kind: output, shape index: {}]  }
   0x1   :  { %1084 = sst [smem:[#allocation12_spill]] %s1077_s1 }
   0x2   :  { %8 = vsyncpa [#allocation3], 0 }
   0x3   :  { %10 = vsyncpa [#allocation3 + $0x1], 0 }
   0x4   :  { %11 = vsyncpa [#allocation6], 0 }
   0x5   :  { %13 = vsyncpa [#allocation6 + $0x1], 0 }
   0x6   :  { %14 = vsyncpa [#allocation4], 0 }
   0x7   :  { %16 = vsyncpa [#allocation4 + $0x1], 0  ;;  %s835_s12 = smov 0   ;;  %s837_s13 = smov 0  }
   0x8   :  { %s839_s14 = smov 0   ;;  %s841_s15 = smov 0  }
   0x9 LB: > { %s856_s16 = sadd.s32 4294967295, %s807_s15   ;;  %s550_s17 = sadd.s32 4294967294, %s807_s15   ;;  %s807_s15 = sphi %s841_s15, %s1103_s15   ;;  %s803_s14 = sphi %s839_s14, %s1102_s14   ;;  %s799_s13 = sphi %s837_s13, %s1101_s13   ;;  %s795_s12 = sphi %s835_s12, %s1100_s12  }
   0xa   : > { %s860_s18 = sadd.s32 1, %s807_s15   ;;  %s29_s19 = sadd.s32 1, %s803_s14 }
   0xb   : > { %s26_s20 = ssub.s32 %s807_s15, %s860_s18  ;;  %p36_p0 = scmp.ne.s32.totalorder %s803_s14, %s799_s13 }
   0xc   : > { %p27_p1 = scmp.eq.s32.totalorder %s26_s20, 0  ;;  %p37_p2 = scmp.eq.s32.totalorder %s807_s15, 0 }
   0xd   : > { %p42_p3 = scmp.ne.s32.totalorder %s799_s13, %s795_s12  ;;  %p43_p4 = scmp.eq.s32.totalorder %s856_s16, 0 }
   0xe   : > { %s872_s21 = scalar_select %p27_p1, %s803_s14, %s29_s19  }
   0xf   : > { %p38_p5 = por %p37_p2, %p36_p0  ;;  %p874_p6 = por %p43_p4, %p42_p3 }
  0x10   : > { %p118_p7 = scmp.eq.s32.totalorder %s856_s16, 1  ;;  %p124_p8 = scmp.eq.s32.totalorder %s550_s17, 1 }
  0x11   : > { %s1085_s22 = scalar_select %p874_p6, 1, 0 }
  0x12   : > { %p607_p10 = scmp.lt.s32.totalorder %s807_s15, 2  ;;  %p881_p11 = por %p118_p7, %p36_p0 }
  0x13   : > { %p885_p12 = por %p124_p8, %p42_p3  ;;  %s144_s25 = sand.u32 1, %s803_s14  }
  0x14   : > { %s1086_s23 = scalar_select %p881_p11, 1, 0 }
  0x15   : > { %s1087_s24 = scalar_select %p885_p12, 1, 0 }
  0x16   : > { %s891_s26 = sshll.u32 %s807_s15, 7  ;;  %s895_s27 = sshll.u32 %s144_s25, 3 }
  0x17   : > { %p897_p13 = pnand %p607_p10, %p38_p5  ;;  %s162_s29 = sand.u32 1, %s807_s15  }
  0x18   : > { %s1089_s1 = sld [smem:[#allocation12_spill]]  ;;  %s166_s6 = scalar_lea.vmem [#allocation5], %s895_s27 }
  0x19   : > { %s1088_s28 = scalar_select %p897_p13, 1, 0 }
  0x1a   : > { %s173_s7 = sshll.u32 %s166_s6, 4  ;;  %s912_s8 = scalar_lea.sflag [#allocation6], %s162_s29  ;;  %s909_s7 = int_to_ptr.vmem [resolvable:$true] %s173_s7 }
  0x1b   : > { %p918_p2 = pneg %p897_p13 }
  0x1e   : > { %s906_s5 = scalar_lea.hbm %s1089_s1, %s891_s26  ;;  %s652_s19 = scalar_lea.hbm %s1089_s1, 256 }
  0x1f   : > { %s647_s9 = scalar_lea.hbm %s906_s5, 128  ;;  %p653_p5 = scmp.lt.u32.totalorder %s906_s5, %s1089_s1 }
  0x20   : > { %p648_p1 = scmp.ne.s32.totalorder %s906_s5, %s647_s9  ;;  %p654_p7 = scmp.lt.u32.totalorder %s652_s19, %s647_s9 }
  0x21   : > { %p656_p10 = scmp.lt.u32.totalorder %s647_s9, %s906_s5 }
  0x22   : > { %p650_p3 = pnand %p918_p2, %p648_p1  ;;  %p655_p8 = por %p654_p7, %p653_p5 }
  0x24   : > { %p651_p4 = pneg %p650_p3  ;;  %p657_p9 = por %p656_p10, %p655_p8 }
  0x26   : > { %p658_p0 = pnand %p657_p9, %p651_p4 }
  0x28   : > { %661 = shalt.err (!%p658_p0)
}
  0x29   : > { %s662_s29 = scalar_lea.vmem %s909_s7, 128  ;;  %s809_s4 = smov [#allocation5]  }
  0x2a   : > { %p663_p1 = scmp.ne.s32.totalorder %s909_s7, %s662_s29  ;;  %s667_s6 = sshll.u32 %s809_s4, 4  ;;  %s668_s6 = int_to_ptr.vmem [resolvable:$false] %s667_s6 }
  0x2b   : > { %s669_s11 = scalar_lea.vmem %s668_s6, 256  ;;  %p670_p11 = scmp.lt.s32.totalorder %s909_s7, %s668_s6 }
  0x2c   : > { %p665_p3 = pnand %p663_p1, %p918_p2  ;;  %p671_p6 = scmp.lt.s32.totalorder %s669_s11, %s662_s29 }
  0x2e   : > { %p666_p12 = pneg %p665_p3  ;;  %p672_p5 = por %p671_p6, %p670_p11 }
  0x30   : > { %p673_p7 = pnand %p672_p5, %p666_p12 }
  0x32   : > { %676 = shalt.err (!%p673_p7)
}
  0x33   : > { %599 = dma.hbm_to_vmem [thread:$0]  (!%p897_p13), %s906_s5, 128, %s909_s7, %s912_s8  }
  0x34   : > { %p196_p9 = scmp.lt.s32.totalorder %s807_s15, 3  ;;  %s947_s19 = scalar_lea.hbm %s1076_s0, %s891_s26 }
  0x35   : > { %p1091_p6 = scmp.ge.s32.totalorder %s807_s15, 1  ;;  %s148_s30 = scalar_lea.vmem [#allocation2], %s895_s27 }
  0x36   : > { %s155_s29 = sshll.u32 %s148_s30, 4  ;;  %s145_s5 = scalar_lea.sflag [#allocation3], %s144_s25  ;;  %s156_s29 = int_to_ptr.vmem [resolvable:$true] %s155_s29 }
  0x37   : > { %p951_p11 = pnand %p1091_p6, %p196_p9  ;;  %s677_s7 = scalar_lea.hbm %s947_s19, 128 }
  0x38   : > { %p678_p12 = scmp.ne.s32.totalorder %s947_s19, %s677_s7  ;;  %s682_s11 = scalar_lea.hbm %s1076_s0, 256 }
  0x39   : > { %s1092_s20 = scalar_select %p951_p11, 1, 0 }
  0x3a   : > { %p680_p0 = pnand %p678_p12, %p918_p2  ;;  %p683_p8 = scmp.lt.u32.totalorder %s947_s19, %s1076_s0 }
  0x3b   : > { %p684_p10 = scmp.lt.u32.totalorder %s682_s11, %s677_s7  ;;  %p686_p3 = scmp.lt.u32.totalorder %s677_s7, %s947_s19 }
  0x3c   : > { %p681_p4 = pneg %p680_p0 }
  0x3d   : > { %p685_p1 = por %p684_p10, %p683_p8 }
  0x3f   : > { %p687_p5 = por %p686_p3, %p685_p1 }
  0x41   : > { %p688_p7 = pnand %p687_p5, %p681_p4 }
  0x43   : > { %691 = shalt.err (!%p688_p7)
}
  0x44   : > { %s692_s25 = scalar_lea.vmem %s156_s29, 128  ;;  %s810_s30 = smov [#allocation2]  }
  0x45   : > { %p693_p9 = scmp.ne.s32.totalorder %s156_s29, %s692_s25  ;;  %s697_s1 = sshll.u32 %s810_s30, 4  ;;  %s698_s1 = int_to_ptr.vmem [resolvable:$false] %s697_s1 }
  0x46   : > { %s699_s4 = scalar_lea.vmem %s698_s1, 256  ;;  %p700_p0 = scmp.lt.s32.totalorder %s156_s29, %s698_s1 }
  0x47   : > { %p695_p6 = pnand %p693_p9, %p918_p2  ;;  %p701_p11 = scmp.lt.s32.totalorder %s699_s4, %s692_s25 }
  0x49   : > { %p696_p12 = pneg %p695_p6  ;;  %p702_p13 = por %p701_p11, %p700_p0 }
  0x4b   : > { %p703_p8 = pnand %p702_p13, %p696_p12 }
  0x4d   : > { %706 = shalt.err (!%p703_p8)
}
  0x4e   : > { %p1093_p10 = scmp.ne.s32.totalorder %s1088_s28, 0  ;;  %s979_s11 = scalar_lea.hbm %s1078_s2, %s891_s26 }
  0x4f   : > { %s184_s1 = scalar_lea.vmem [#allocation7], %s895_s27  ;;  %s707_s17 = scalar_lea.hbm %s979_s11, 128 }
  0x50   : > { %596 = dma.hbm_to_vmem [thread:$0]  (!%p1093_p10), %s947_s19, 128, %s156_s29, %s145_s5  }
  0x51   : > { %s191_s9 = sshll.u32 %s184_s1, 4  ;;  %p708_p13 = scmp.ne.s32.totalorder %s979_s11, %s707_s17  ;;  %s192_s9 = int_to_ptr.vmem [resolvable:$true] %s191_s9 }
  0x52   : > { %s712_s19 = scalar_lea.hbm %s1078_s2, 256  ;;  %p713_p1 = scmp.lt.u32.totalorder %s979_s11, %s1078_s2 }
  0x53   : > { %p710_p11 = pnand %p708_p13, %p918_p2  ;;  %p714_p3 = scmp.lt.u32.totalorder %s712_s19, %s707_s17 }
  0x54   : > { %p716_p7 = scmp.lt.u32.totalorder %s707_s17, %s979_s11 }
  0x55   : > { %p711_p4 = pneg %p710_p11  ;;  %p715_p5 = por %p714_p3, %p713_p1 }
  0x57   : > { %p717_p9 = por %p716_p7, %p715_p5 }
  0x59   : > { %p718_p6 = pnand %p717_p9, %p711_p4 }
  0x5b   : > { %721 = shalt.err (!%p718_p6)
}
  0x5c   : > { %s722_s26 = scalar_lea.vmem %s192_s9, 128  ;;  %s811_s27 = smov [#allocation7]  }
  0x5d   : > { %p723_p12 = scmp.ne.s32.totalorder %s192_s9, %s722_s26  ;;  %s727_s4 = sshll.u32 %s811_s27, 4  ;;  %s728_s4 = int_to_ptr.vmem [resolvable:$false] %s727_s4 }
  0x5e   : > { %s729_s7 = scalar_lea.vmem %s728_s4, 256  ;;  %p730_p13 = scmp.lt.s32.totalorder %s192_s9, %s728_s4 }
  0x5f   : > { %p725_p0 = pnand %p723_p12, %p918_p2  ;;  %p731_p11 = scmp.lt.s32.totalorder %s729_s7, %s722_s26 }
  0x61   : > { %p726_p8 = pneg %p725_p0  ;;  %p732_p10 = por %p731_p11, %p730_p13 }
  0x63   : > { %p733_p1 = pnand %p732_p10, %p726_p8 }
  0x65   : > { %736 = shalt.err (!%p733_p1)
}
  0x66   : > { %p1094_p3 = scmp.ne.s32.totalorder %s1088_s28, 0  ;;  %p1095_p4 = scmp.ne.s32.totalorder %s1092_s20, 0 }
  0x67   : > { %s1003_s10 = sand.u32 (!%p1095_p4), 1, %s799_s13   ;;  %p1096_p2 = scmp.ne.s32.totalorder (!%p1095_p4), %s1085_s22, 0 }
  0x68   : > { %602 = dma.hbm_to_vmem [thread:$0]  (!%p1094_p3), %s979_s11, 128, %s192_s9, %s912_s8  }
  0x69   : > { %200 = sbr.rel (%p1095_p4) target bundleno = 874 (0x36a), region = 32  ;;  %s1006_s6 = sshll.u32 (!%p1095_p4), %s1003_s10, 3 }
  0x6a   : > { %s203_s1 = scalar_lea.sflag (!%p1095_p4), [#allocation3], %s1003_s10  ;;  %s206_s17 = scalar_lea.vmem (!%p1095_p4), [#allocation2], %s1006_s6 }
  0x70   : > { %782 = dma.done.wait (%p1096_p2), %s203_s1, 128  }
  0x71   : > { %784 = vsyncadd (%p1096_p2), %s203_s1, 4294967168  ;;  %s211_s28 = sand.u32 1, %s856_s16   ;;  %s215_s20 = scalar_lea.vmem [#allocation5], %s1006_s6 }
  0x72   : > { %s212_s8 = scalar_lea.sflag [#allocation6], %s211_s28 }
  0x73   : > { %786 = dma.done.wait (%p1096_p2), %s212_s8, 256  }
  0x74   : > { %788 = vsyncadd (%p1096_p2), %s212_s8, 4294967040  ;;  %v812_v0 = vmov 0.0   ;;  %vm813_vm0 = vmmov 0   ;;  %vm260_vm1 = vcmask 261120   ;;  %v258_v1 = vld [vmem:[%s215_s20] sm:$0xff]  ;;  %v257_v2 = vld [vmem:[%s206_s17] sm:$0xff] }
  0x75   : > { %575 = vmatprep.subr.mxu0 %v812_v0  ;;  %577 = vmatprep.mubr.msk.f32.mxu0 %vm813_vm0, %v812_v0  ;;  %vm337_vm2 = vcmask 64512   ;;  %s224_s22 = scalar_lea.vmem [#allocation7], %s1006_s6  ;;  %s568_s11 = sshll.u32 %s856_s16, 7 }
  0x76   : > { %580 = vmatprep.subr.mxu1 %v812_v0  ;;  %582 = vmatprep.mubr.msk.f32.mxu1 %vm813_vm0, %v812_v0  ;;  %v259_v11 = vld [vmem:[%s224_s22] sm:$0xff]  ;;  %s256_s9 = scalar_lea.vmem [#allocation8], %s1006_s6  ;;  %s1031_s29 = scalar_lea.hbm %s1079_s3, %s568_s11 }
  0x77   : > { %576 = vmatpush3.xpose.msk.msra.mxu0 %vm260_vm1, %v258_v1  ;;  %581 = vmatpush3.msra.mxu1 %v259_v11  ;;  %s437_s25 = sshll.u32 %s256_s9, 4  ;;  %s424_s5 = scalar_lea.sflag [#allocation4], %s1003_s10  ;;  %s1033_s25 = int_to_ptr.vmem [resolvable:$true] %s437_s25 }
  0x78   : > { %s737_s26 = scalar_lea.vmem %s1033_s25, 128  ;;  %p1097_p5 = scmp.ne.s32.totalorder %s1086_s23, 0 }
  0x79   : > { %p738_p10 = scmp.ne.s32.totalorder %s1033_s25, %s737_s26  ;;  %s814_s16 = smov [#allocation8]  }
  0x7a   : > { %578 = vmatmul.mubr.msk.f32.vlgmr.msra.gmra.mrb[0].mxu0 %vm260_vm1, %v257_v2  ;;  %s741_s27 = sshll.u32 %s814_s16, 4  ;;  %s742_s27 = int_to_ptr.vmem [resolvable:$false] %s741_s27 }
  0x7b   : > { %p739_p7 = pnand %p738_p10, %p1097_p5  ;;  %s743_s4 = scalar_lea.vmem %s742_s27, 256 }
  0x7c   : > { %p744_p6 = scmp.lt.s32.totalorder %s1033_s25, %s742_s27  ;;  %p745_p12 = scmp.lt.s32.totalorder %s743_s4, %s737_s26 }
  0x7d   : > { %p740_p9 = pneg %p739_p7 }
  0x7e   : > { %p746_p0 = por %p745_p12, %p744_p6 }
  0x80   : > { %p747_p8 = pnand %p746_p0, %p740_p9 }
 0x14d   : > { %v333_v3 = vpop.f32.mrb[0].mxu0 }
 0x14e   : > { %v579_v4 = vpop.f32.mrb[1].mxu0  ;;  %v338_v5 = vsel %vm337_vm2, %v333_v3, -inf }
 0x14f   : > { %339 = vmax.xlane.f32.xlu0 %v338_v5 }
 0x1dc   : > { %v340_v6 = vpop.xlane.xlu0 %339 }
 0x1dd   : > { %v341_v7 = vsub.f32 %v333_v3, %v340_v6 }
 0x1df   : > { %v342_v8 = vmul.f32 1.442695, %v341_v7 }
 0x1e1   : > { %643 = vpow2.f32 %v342_v8 }
 0x1eb   : > { %v644_v9 = vpop.eup %643 }
 0x1ec   : > { %v344_v10 = vsel %vm337_vm2, %v644_v9, 0.0 }
 0x1ed   : > { %345 = vadd.xlane.f32.xlu0 %v344_v10 }
 0x27a   : > { %v346_v12 = vpop.xlane.xlu0 %345 }
 0x27b   : > { %645 = vrcp.f32 %v346_v12 }
 0x285   : > { %v646_v13 = vpop.eup %645 }
 0x286   : > { %v348_v14 = vmul.f32 %v646_v13, %v644_v9 }
 0x288   : > { %583 = vmatmul.mubr.msk.f32.vlgmr.msra.gmra.mrb[0].mxu1 %vm337_vm2, %v348_v14 }
 0x35b   : > { %v418_v15 = vpop.f32.mrb[0].mxu1 }
 0x35c   : > { %422 = vst.msk [vmem:[%s256_s9] sm:$0xff] %vm260_vm1, %v418_v15  ;;  %v584_v16 = vpop.f32.mrb[1].mxu1 }
 0x35d   : > { %750 = shalt.err (!%p747_p8)
}
 0x35e   : > { %s751_s7 = scalar_lea.hbm %s1031_s29, 128  ;;  %s755_s1 = scalar_lea.hbm %s1079_s3, 256 }
 0x35f   : > { %p752_p13 = scmp.ne.s32.totalorder %s1031_s29, %s751_s7  ;;  %p756_p3 = scmp.lt.u32.totalorder %s1031_s29, %s1079_s3 }
 0x360   : > { %p757_p4 = scmp.lt.u32.totalorder %s755_s1, %s751_s7  ;;  %p759_p10 = scmp.lt.u32.totalorder %s751_s7, %s1031_s29 }
 0x361   : > { %p753_p11 = pnand %p752_p13, %p1097_p5 }
 0x362   : > { %p758_p2 = por %p757_p4, %p756_p3 }
 0x363   : > { %p754_p1 = pneg %p753_p11 }
 0x364   : > { %p760_p7 = por %p759_p10, %p758_p2 }
 0x366   : > { %p761_p9 = pnand %p760_p7, %p754_p1 }
 0x368   : > { %764 = shalt.err (!%p761_p9)
}
 0x369   : > { %591 = dma.vmem_to_hbm [thread:$0]  (%p1097_p5), %s1033_s25, 128, %s1031_s29, %s424_s5  }
 0x36a PF: > { %s449_s8 = sand.u32 1, %s795_s12   ;;  %p1098_p6 = scmp.ne.s32.totalorder %s1087_s24, 0 }
 0x36b   : > { %p1099_p12 = scmp.ge.s32.totalorder %s807_s15, 2  ;;  %s450_s20 = scalar_lea.sflag [#allocation4], %s449_s8 }
 0x36d   : > { %p604_p0 = pnand %p1099_p12, %p1098_p6 }
 0x36f   : > { %790 = dma.done.wait (!%p604_p0), %s450_s20, 128  }
 0x370   : > { %792 = vsyncadd (!%p604_p0), %s450_s20, 4294967168  ;;  %p19_p8 = scmp.ge.s32.totalorder %s860_s18, 4   ;;  %s1100_s12 = smov %s799_s13 }
 0x371   : > { %s1101_s13 = smov %s803_s14  ;;  %s1102_s14 = smov %s872_s21 }
 0x372   : > { %s1103_s15 = smov %s860_s18  ;;  %21 = sbr.rel (!%p19_p8) target bundleno = 9 (0x9), region = 101 }
 0x379   :  { %455 = vsyncpa [#allocation3], 1 }
 0x37a   :  { %457 = vsyncpa [#allocation3 + $0x1], 1 }
 0x37b   :  { %458 = vsyncpa [#allocation6], 1 }
 0x37c   :  { %460 = vsyncpa [#allocation6 + $0x1], 1 }
 0x37d   :  { %461 = vsyncpa [#allocation4], 1 }
 0x37e   :  { %463 = vsyncpa [#allocation4 + $0x1], 1 }

</bundles_post_ra>
